<compile_context>
chip_gen: v5e
topology: v5e:2x2
jax: 0.10.0
libtpu: 0.0.40
codegen_flags: <defaults>
</compile_context>

<pallas_src>
import functools

import jax
import jax.numpy as jnp
from jax.experimental import pallas as pl
from jax.experimental.pallas import tpu as pltpu

IN_F = 320
HID_F = 155
OUT_F = 10
BN_EPS = 1e-5

HID_PAD = 256          # 155 -> 256 (lane multiple for the MXU)
OUT_PAD = 128          # internal y width (lane multiple); HBM output stays 10 wide
MAX_TILE_B = 4096      # v7x-safe default tile (fits halved VMEM with headroom)
VMEM_LIMIT_BYTES = 48 * 1024 * 1024
FUSED_VMEM_BUDGET = 40 * 1024 * 1024   # cutoff for keeping y resident in VMEM


def _round_up(n, m):
    return ((n + m - 1) // m) * m


# ----------------------- Fused single-call kernel (default path) -----------------------
def _fused_kernel(x_ref, w1_ref, b1_ref, w2_ref, gamma_ref, beta_ref, o_ref,
                  y_scr, sum_scr, sq_scr, scale_scr, shift_scr,
                  *, tile_b, batch, needs_mask):
    p = pl.program_id(0)   # phase: 0 = matmuls + stats, 1 = normalize + store
    j = pl.program_id(1)   # batch tile

    @pl.when((p == 0) & (j == 0))
    def _():
        sum_scr[...] = jnp.zeros_like(sum_scr)
        sq_scr[...] = jnp.zeros_like(sq_scr)

    @pl.when(p == 0)
    def _():
        x = x_ref[...]                                                    # (tile_b, 320)
        h = jnp.dot(x, w1_ref[...],
                    preferred_element_type=jnp.float32) + b1_ref[...]     # (tile_b, 256)
        # fc2 bias omitted: removed exactly by the BN batch-mean subtraction.
        y = jnp.dot(h, w2_ref[...],
                    preferred_element_type=jnp.float32)                   # (tile_b, 128)
        y_scr[j] = y
        if needs_mask:
            row = jax.lax.broadcasted_iota(jnp.int32, (tile_b, 1), 0) + j * tile_b
            ym = jnp.where(row < batch, y, 0.0)   # where (not *) so junk/NaN rows vanish
        else:
            ym = y
        sum_scr[...] += jnp.sum(ym, axis=0, keepdims=True)
        sq_scr[...] += jnp.sum(ym * ym, axis=0, keepdims=True)

    @pl.when((p == 1) & (j == 0))
    def _():
        inv_n = 1.0 / float(batch)
        mean = sum_scr[...] * inv_n
        var = jnp.maximum(sq_scr[...] * inv_n - mean * mean, 0.0)
        scale = gamma_ref[...] * jax.lax.rsqrt(var + BN_EPS)
        scale_scr[...] = scale
        shift_scr[...] = beta_ref[...] - mean * scale

    @pl.when(p == 1)
    def _():
        yn = y_scr[j] * scale_scr[...] + shift_scr[...]
        o_ref[...] = yn[:, :OUT_F]


def _fused_forward(xp, w1p, b1p, w2p, gp, bp, *, batch, tile_b, n_tiles, needs_mask):
    b_pad = n_tiles * tile_b
    return pl.pallas_call(
        functools.partial(_fused_kernel, tile_b=tile_b, batch=batch,
                          needs_mask=needs_mask),
        out_shape=jax.ShapeDtypeStruct((b_pad, OUT_F), jnp.float32),
        grid=(2, n_tiles),
        in_specs=[
            pl.BlockSpec((tile_b, IN_F),
                         lambda p, j: ((1 - p) * j + p * (n_tiles - 1), 0)),
            pl.BlockSpec((IN_F, HID_PAD), lambda p, j: (0, 0)),
            pl.BlockSpec((1, HID_PAD), lambda p, j: (0, 0)),
            pl.BlockSpec((HID_PAD, OUT_PAD), lambda p, j: (0, 0)),
            pl.BlockSpec((1, OUT_PAD), lambda p, j: (0, 0)),
            pl.BlockSpec((1, OUT_PAD), lambda p, j: (0, 0)),
        ],
        out_specs=pl.BlockSpec((tile_b, OUT_F), lambda p, j: (p * j, 0)),
        scratch_shapes=[
            pltpu.VMEM((n_tiles, tile_b, OUT_PAD), jnp.float32),  # resident y
            pltpu.VMEM((1, OUT_PAD), jnp.float32),                # sum(y)
            pltpu.VMEM((1, OUT_PAD), jnp.float32),                # sum(y^2)
            pltpu.VMEM((1, OUT_PAD), jnp.float32),                # BN scale
            pltpu.VMEM((1, OUT_PAD), jnp.float32),                # BN shift
        ],
        compiler_params=pltpu.CompilerParams(
            dimension_semantics=("arbitrary", "arbitrary"),
            vmem_limit_bytes=VMEM_LIMIT_BYTES),
    )(xp, w1p, b1p, w2p, gp, bp)


# ------------------ Two-pass fallback (y too large to keep in VMEM) --------------------
def _matmul_stats_kernel(x_ref, w1_ref, b1_ref, w2_ref, y_ref, sum_ref, sq_ref,
                         *, tile_b, batch, needs_mask):
    j = pl.program_id(0)

    @pl.when(j == 0)
    def _():
        sum_ref[...] = jnp.zeros_like(sum_ref)
        sq_ref[...] = jnp.zeros_like(sq_ref)

    h = jnp.dot(x_ref[...], w1_ref[...],
                preferred_element_type=jnp.float32) + b1_ref[...]
    y = jnp.dot(h, w2_ref[...], preferred_element_type=jnp.float32)
    y_ref[...] = y[:, :OUT_F]                       # narrow (40 B/row) HBM intermediate
    if needs_mask:
        row = jax.lax.broadcasted_iota(jnp.int32, (tile_b, 1), 0) + j * tile_b
        ym = jnp.where(row < batch, y, 0.0)
    else:
        ym = y
    sum_ref[...] += jnp.sum(ym, axis=0, keepdims=True)
    sq_ref[...] += jnp.sum(ym * ym, axis=0, keepdims=True)


def _bn_apply_kernel(y_ref, scale_ref, shift_ref, o_ref):
    o_ref[...] = y_ref[...] * scale_ref[...] + shift_ref[...]


def _two_pass_forward(xp, w1p, b1p, w2p, gp, bp, *, batch, tile_b, n_tiles, needs_mask):
    b_pad = n_tiles * tile_b

    y, ysum, ysq = pl.pallas_call(
        functools.partial(_matmul_stats_kernel, tile_b=tile_b, batch=batch,
                          needs_mask=needs_mask),
        out_shape=(jax.ShapeDtypeStruct((b_pad, OUT_F), jnp.float32),
                   jax.ShapeDtypeStruct((1, OUT_PAD), jnp.float32),
                   jax.ShapeDtypeStruct((1, OUT_PAD), jnp.float32)),
        grid=(n_tiles,),
        in_specs=[pl.BlockSpec((tile_b, IN_F), lambda i: (i, 0)),
                  pl.BlockSpec((IN_F, HID_PAD), lambda i: (0, 0)),
                  pl.BlockSpec((1, HID_PAD), lambda i: (0, 0)),
                  pl.BlockSpec((HID_PAD, OUT_PAD), lambda i: (0, 0))],
        out_specs=(pl.BlockSpec((tile_b, OUT_F), lambda i: (i, 0)),
                   pl.BlockSpec((1, OUT_PAD), lambda i: (0, 0)),
                   pl.BlockSpec((1, OUT_PAD), lambda i: (0, 0))),
        compiler_params=pltpu.CompilerParams(
            dimension_semantics=("arbitrary",),
            vmem_limit_bytes=VMEM_LIMIT_BYTES),
    )(xp, w1p, b1p, w2p)

    # Tiny (1, 10) BN scale/shift computed once (not per tile).
    inv_n = 1.0 / float(batch)
    mean = ysum[:, :OUT_F] * inv_n
    var = jnp.maximum(ysq[:, :OUT_F] * inv_n - mean * mean, 0.0)
    scale = gp[:, :OUT_F] * jax.lax.rsqrt(var + BN_EPS)
    shift = bp[:, :OUT_F] - mean * scale

    out = pl.pallas_call(
        _bn_apply_kernel,
        out_shape=jax.ShapeDtypeStruct((b_pad, OUT_F), jnp.float32),
        grid=(n_tiles,),
        in_specs=[pl.BlockSpec((tile_b, OUT_F), lambda i: (i, 0)),
                  pl.BlockSpec((1, OUT_F), lambda i: (0, 0)),
                  pl.BlockSpec((1, OUT_F), lambda i: (0, 0))],
        out_specs=pl.BlockSpec((tile_b, OUT_F), lambda i: (i, 0)),
        compiler_params=pltpu.CompilerParams(
            dimension_semantics=("parallel",),
            vmem_limit_bytes=VMEM_LIMIT_BYTES),
    )(y, scale, shift)
    return out


# --------------------------------------- Wrapper ---------------------------------------
def prepare_params(w1, b1, w2, b2, gamma, beta):
    """Pad parameters to lane-friendly shapes ONCE (hoisted out of the per-call path)."""
    del b2  # cancels exactly under training-mode BatchNorm (batch-mean subtraction)
    w1p = jnp.zeros((IN_F, HID_PAD), jnp.float32).at[:, :HID_F].set(w1)
    b1p = jnp.zeros((1, HID_PAD), jnp.float32).at[:, :HID_F].set(b1)
    w2p = jnp.zeros((HID_PAD, OUT_PAD), jnp.float32).at[:HID_F, :OUT_F].set(w2)
    gp = jnp.zeros((1, OUT_PAD), jnp.float32).at[:, :OUT_F].set(gamma)
    bp = jnp.zeros((1, OUT_PAD), jnp.float32).at[:, :OUT_F].set(beta)
    return w1p, b1p, w2p, gp, bp


def _fused_vmem_bytes(tile_b, n_tiles):
    x_buf = 2 * tile_b * IN_F * 4
    w_buf = 2 * (IN_F * HID_PAD + HID_PAD + HID_PAD * OUT_PAD + 2 * OUT_PAD) * 4
    o_buf = 2 * tile_b * OUT_F * 4
    y_scr = n_tiles * tile_b * OUT_PAD * 4
    misc = 4 * (OUT_PAD * 4)
    return x_buf + w_buf + o_buf + y_scr + misc


@functools.partial(jax.jit, static_argnames=("tile_b", "force_two_pass"))
def mlp_forward(x, w1p, b1p, w2p, gp, bp, *, tile_b=None, force_two_pass=False):
    x = x.astype(jnp.float32)
    B = x.shape[0]
    if tile_b is None:
        tile_b = min(MAX_TILE_B, _round_up(B, 8))
    tile_b = _round_up(tile_b, 8)
    b_pad = _round_up(B, tile_b)
    n_tiles = b_pad // tile_b
    needs_mask = b_pad != B

    if needs_mask:
        # Pad only the tail tile (< tile_b zero rows); in-kernel mask keeps stats exact.
        xp = jnp.concatenate(
            [x, jnp.zeros((b_pad - B, IN_F), jnp.float32)], axis=0)
    else:
        xp = x  # aligned batch: no copy at all

    use_fused = (not force_two_pass) and (
        _fused_vmem_bytes(tile_b, n_tiles) <= FUSED_VMEM_BUDGET)

    if use_fused:
        out = _fused_forward(xp, w1p, b1p, w2p, gp, bp, batch=B, tile_b=tile_b,
                             n_tiles=n_tiles, needs_mask=needs_mask)
    else:
        out = _two_pass_forward(xp, w1p, b1p, w2p, gp, bp, batch=B, tile_b=tile_b,
                                n_tiles=n_tiles, needs_mask=needs_mask)

    return out[:B] if needs_mask else out


# ------------------------------- Init & pure-JAX reference -----------------------------
def init_params(key):
    """Deterministic init mimicking PyTorch Linear default (uniform +/- 1/sqrt(fan_in))."""
    k1, k2, k3, k4 = jax.random.split(key, 4)
    lim1 = 1.0 / jnp.sqrt(IN_F)
    lim2 = 1.0 / jnp.sqrt(HID_F)
    # stored as (in, out): transposed vs. PyTorch's (out, in) weight layout
    w1 = jax.random.uniform(k1, (IN_F, HID_F), jnp.float32, -lim1, lim1)
    b1 = jax.random.uniform(k2, (1, HID_F), jnp.float32, -lim1, lim1)
    w2 = jax.random.uniform(k3, (HID_F, OUT_F), jnp.float32, -lim2, lim2)
    b2 = jax.random.uniform(k4, (1, OUT_F), jnp.float32, -lim2, lim2)
    gamma = jnp.ones((1, OUT_F), jnp.float32)   # BatchNorm1d weight
    beta = jnp.zeros((1, OUT_F), jnp.float32)   # BatchNorm1d bias
    return w1, b1, w2, b2, gamma, beta


def reference_forward(x, w1, b1, w2, b2, gamma, beta):
    h = x @ w1 + b1
    y = h @ w2 + b2
    mean = jnp.mean(y, axis=0, keepdims=True)
    var = jnp.mean((y - mean) ** 2, axis=0, keepdims=True)
    return (y - mean) / jnp.sqrt(var + BN_EPS) * gamma + beta


if __name__ == "__main__":
    key = jax.random.PRNGKey(0)
    kx, kp = jax.random.split(key)
    raw = init_params(kp)
    padded = prepare_params(*raw)

    # Case 1: small aligned batch, single tile, fused path, no x copy.
    B = 8
    x = jax.random.normal(kx, (B, IN_F), jnp.float32)
    out = mlp_forward(x, *padded)
    jax.block_until_ready(out)
    ref = reference_forward(x, *raw)
    assert out.shape == (B, OUT_F)
    assert jnp.allclose(out, ref, atol=1e-3, rtol=1e-3), "mismatch (fused, B=8)"

    # Case 2: multi-tile fused path (cross-tile BN statistics through VMEM-resident y).
    B2 = 24
    x2 = jax.random.normal(jax.random.fold_in(kx, 1), (B2, IN_F), jnp.float32)
    out2 = mlp_forward(x2, *padded, tile_b=8)
    jax.block_until_ready(out2)
    ref2 = reference_forward(x2, *raw)
    assert out2.shape == (B2, OUT_F)
    assert jnp.allclose(out2, ref2, atol=1e-3, rtol=1e-3), "mismatch (fused, B=24)"

    # Case 3: ragged batch -> tail-tile padding + in-kernel row mask.
    B3 = 13
    x3 = jax.random.normal(jax.random.fold_in(kx, 2), (B3, IN_F), jnp.float32)
    out3 = mlp_forward(x3, *padded, tile_b=8)
    jax.block_until_ready(out3)
    ref3 = reference_forward(x3, *raw)
    assert out3.shape == (B3, OUT_F)
    assert jnp.allclose(out3, ref3, atol=1e-3, rtol=1e-3), "mismatch (fused ragged, B=13)"

    # Case 4: forced two-pass fallback (the huge-batch path) on the same data.
    out4 = mlp_forward(x2, *padded, tile_b=8, force_two_pass=True)
    jax.block_until_ready(out4)
    assert out4.shape == (B2, OUT_F)
    assert jnp.allclose(out4, ref2, atol=1e-3, rtol=1e-3), "mismatch (two-pass, B=24)"

    print("KERNEL_OK")
</pallas_src>

<mosaic_0001>
module attributes {stable_mosaic.version = 11 : i64} {
  func.func @_fused_kernel(%arg0: i32, %arg1: i32, %arg2: memref<8x320xf32, #tpu.memory_space<vmem>>, %arg3: memref<320x256xf32, #tpu.memory_space<vmem>>, %arg4: memref<1x256xf32, #tpu.memory_space<vmem>>, %arg5: memref<256x128xf32, #tpu.memory_space<vmem>>, %arg6: memref<1x128xf32, #tpu.memory_space<vmem>>, %arg7: memref<1x128xf32, #tpu.memory_space<vmem>>, %arg8: memref<8x10xf32, #tpu.memory_space<vmem>>, %arg9: memref<1x8x128xf32, #tpu.memory_space<vmem>>, %arg10: memref<1x128xf32, #tpu.memory_space<vmem>>, %arg11: memref<1x128xf32, #tpu.memory_space<vmem>>, %arg12: memref<1x128xf32, #tpu.memory_space<vmem>>, %arg13: memref<1x128xf32, #tpu.memory_space<vmem>>) attributes {dimension_semantics = [#tpu.dimension_semantics<arbitrary>, #tpu.dimension_semantics<arbitrary>], iteration_bounds = array<i64: 2, 1>, scalar_prefetch = 0 : i64, scratch_operands = 5 : i64, tpu.core_type = #tpu.core_type<tc>, window_params = [{transform_indices = @transform_0, window_bounds = array<i64: 8, 320>}, {pipeline_mode = #tpu.pipeline_mode<synchronous>, transform_indices = @transform_1, window_bounds = array<i64: 320, 256>}, {pipeline_mode = #tpu.pipeline_mode<synchronous>, transform_indices = @transform_2, window_bounds = array<i64: 1, 256>}, {pipeline_mode = #tpu.pipeline_mode<synchronous>, transform_indices = @transform_3, window_bounds = array<i64: 256, 128>}, {pipeline_mode = #tpu.pipeline_mode<synchronous>, transform_indices = @transform_4, window_bounds = array<i64: 1, 128>}, {pipeline_mode = #tpu.pipeline_mode<synchronous>, transform_indices = @transform_5, window_bounds = array<i64: 1, 128>}, {transform_indices = @transform_6, window_bounds = array<i64: 8, 10>}]} {
    %c0_i32 = arith.constant 0 : i32
    %0 = arith.cmpi eq, %arg0, %c0_i32 : i32
    %c0_i32_0 = arith.constant 0 : i32
    %1 = arith.cmpi eq, %arg1, %c0_i32_0 : i32
    %2 = arith.andi %0, %1 : i1
    %3 = arith.extui %2 : i1 to i32
    %c0_i32_1 = arith.constant 0 : i32
    %4 = arith.cmpi ne, %3, %c0_i32_1 : i32
    scf.if %4 {
      %cst = arith.constant 0.000000e+00 : f32
      %16 = vector.broadcast %cst : f32 to vector<1x128xf32>
      %c0 = arith.constant 0 : index
      %c0_8 = arith.constant 0 : index
      %17 = vector.load %arg10[%c0, %c0_8] : memref<1x128xf32, #tpu.memory_space<vmem>>, vector<1x128xf32>
      tpu.vector_store %arg10[%c0, %c0_8], %16 {strides = array<i32>} : memref<1x128xf32, #tpu.memory_space<vmem>>, vector<1x128xf32>,
      %cst_9 = arith.constant 0.000000e+00 : f32
      %18 = vector.broadcast %cst_9 : f32 to vector<1x128xf32>
      %c0_10 = arith.constant 0 : index
      %c0_11 = arith.constant 0 : index
      %19 = vector.load %arg11[%c0_10, %c0_11] : memref<1x128xf32, #tpu.memory_space<vmem>>, vector<1x128xf32>
      tpu.vector_store %arg11[%c0_10, %c0_11], %18 {strides = array<i32>} : memref<1x128xf32, #tpu.memory_space<vmem>>, vector<1x128xf32>,
    } else {
    }
    %c0_i32_2 = arith.constant 0 : i32
    %5 = arith.cmpi eq, %arg0, %c0_i32_2 : i32
    %6 = arith.extui %5 : i1 to i32
    %c0_i32_3 = arith.constant 0 : i32
    %7 = arith.cmpi ne, %6, %c0_i32_3 : i32
    scf.if %7 {
      %c0 = arith.constant 0 : index
      %c0_8 = arith.constant 0 : index
      %16 = vector.load %arg2[%c0, %c0_8] : memref<8x320xf32, #tpu.memory_space<vmem>>, vector<8x320xf32>
      %c0_9 = arith.constant 0 : index
      %c0_10 = arith.constant 0 : index
      %17 = vector.load %arg3[%c0_9, %c0_10] : memref<320x256xf32, #tpu.memory_space<vmem>>, vector<320x256xf32>
      %cst = arith.constant dense<0.000000e+00> : vector<8x256xf32>
      %18 = tpu.matmul %16, %17, %cst {dimension_numbers = #tpu.dot_dimension_numbers<[1], [0], [0], [1], [0, 0, 1, 1], [], []>} : vector<8x320xf32>, vector<320x256xf32>, vector<8x256xf32> -> vector<8x256xf32>
      %c0_11 = arith.constant 0 : index
      %c0_12 = arith.constant 0 : index
      %19 = vector.load %arg4[%c0_11, %c0_12] : memref<1x256xf32, #tpu.memory_space<vmem>>, vector<1x256xf32>
      %20 = vector.broadcast %19 : vector<1x256xf32> to vector<8x256xf32>
      %21 = arith.addf %18, %20 : vector<8x256xf32>
      %c0_13 = arith.constant 0 : index
      %c0_14 = arith.constant 0 : index
      %22 = vector.load %arg5[%c0_13, %c0_14] : memref<256x128xf32, #tpu.memory_space<vmem>>, vector<256x128xf32>
      %cst_15 = arith.constant dense<0.000000e+00> : vector<8x128xf32>
      %23 = tpu.matmul %21, %22, %cst_15 {dimension_numbers = #tpu.dot_dimension_numbers<[1], [0], [0], [1], [0, 0, 1, 1], [], []>} : vector<8x256xf32>, vector<256x128xf32>, vector<8x128xf32> -> vector<8x128xf32>
      %24 = arith.index_cast %arg1 : i32 to index
      %c0_16 = arith.constant 0 : index
      %c0_17 = arith.constant 0 : index
      %25 = vector.load %arg9[%24, %c0_16, %c0_17] : memref<1x8x128xf32, #tpu.memory_space<vmem>>, vector<1x8x128xf32>
      %26 = vector.shape_cast %25 : vector<1x8x128xf32> to vector<8x128xf32>
      %27 = vector.shape_cast %23 : vector<8x128xf32> to vector<1x8x128xf32>
      tpu.vector_store %arg9[%24, %c0_16, %c0_17], %27 {strides = array<i32>} : memref<1x8x128xf32, #tpu.memory_space<vmem>>, vector<1x8x128xf32>,
      %c0_18 = arith.constant 0 : index
      %c0_19 = arith.constant 0 : index
      %28 = vector.load %arg10[%c0_18, %c0_19] : memref<1x128xf32, #tpu.memory_space<vmem>>, vector<1x128xf32>
      %cst_20 = arith.constant dense<0.000000e+00> : vector<128xf32>
      %29 = vector.multi_reduction <add>, %23, %cst_20 [0] : vector<8x128xf32> to vector<128xf32>
      %30 = vector.shape_cast %29 : vector<128xf32> to vector<1x128xf32>
      %31 = arith.addf %28, %30 : vector<1x128xf32>
      %c0_21 = arith.constant 0 : index
      %c0_22 = arith.constant 0 : index
      %32 = vector.load %arg10[%c0_21, %c0_22] : memref<1x128xf32, #tpu.memory_space<vmem>>, vector<1x128xf32>
      tpu.vector_store %arg10[%c0_21, %c0_22], %31 {strides = array<i32>} : memref<1x128xf32, #tpu.memory_space<vmem>>, vector<1x128xf32>,
      %c0_23 = arith.constant 0 : index
      %c0_24 = arith.constant 0 : index
      %33 = vector.load %arg11[%c0_23, %c0_24] : memref<1x128xf32, #tpu.memory_space<vmem>>, vector<1x128xf32>
      %34 = arith.mulf %23, %23 : vector<8x128xf32>
      %cst_25 = arith.constant dense<0.000000e+00> : vector<128xf32>
      %35 = vector.multi_reduction <add>, %34, %cst_25 [0] : vector<8x128xf32> to vector<128xf32>
      %36 = vector.shape_cast %35 : vector<128xf32> to vector<1x128xf32>
      %37 = arith.addf %33, %36 : vector<1x128xf32>
      %c0_26 = arith.constant 0 : index
      %c0_27 = arith.constant 0 : index
      %38 = vector.load %arg11[%c0_26, %c0_27] : memref<1x128xf32, #tpu.memory_space<vmem>>, vector<1x128xf32>
      tpu.vector_store %arg11[%c0_26, %c0_27], %37 {strides = array<i32>} : memref<1x128xf32, #tpu.memory_space<vmem>>, vector<1x128xf32>,
    } else {
    }
    %c1_i32 = arith.constant 1 : i32
    %8 = arith.cmpi eq, %arg0, %c1_i32 : i32
    %c0_i32_4 = arith.constant 0 : i32
    %9 = arith.cmpi eq, %arg1, %c0_i32_4 : i32
    %10 = arith.andi %8, %9 : i1
    %11 = arith.extui %10 : i1 to i32
    %c0_i32_5 = arith.constant 0 : i32
    %12 = arith.cmpi ne, %11, %c0_i32_5 : i32
    scf.if %12 {
      %c0 = arith.constant 0 : index
      %c0_8 = arith.constant 0 : index
      %16 = vector.load %arg10[%c0, %c0_8] : memref<1x128xf32, #tpu.memory_space<vmem>>, vector<1x128xf32>
      %cst = arith.constant 1.250000e-01 : f32
      %17 = vector.broadcast %cst : f32 to vector<1x128xf32>
      %18 = arith.mulf %16, %17 : vector<1x128xf32>
      %c0_9 = arith.constant 0 : index
      %c0_10 = arith.constant 0 : index
      %19 = vector.load %arg11[%c0_9, %c0_10] : memref<1x128xf32, #tpu.memory_space<vmem>>, vector<1x128xf32>
      %cst_11 = arith.constant 1.250000e-01 : f32
      %20 = vector.broadcast %cst_11 : f32 to vector<1x128xf32>
      %21 = arith.mulf %19, %20 : vector<1x128xf32>
      %22 = arith.mulf %18, %18 : vector<1x128xf32>
      %23 = arith.subf %21, %22 : vector<1x128xf32>
      %cst_12 = arith.constant 0.000000e+00 : f32
      %24 = vector.broadcast %cst_12 : f32 to vector<1x128xf32>
      %25 = arith.maximumf %23, %24 : vector<1x128xf32>
      %c0_13 = arith.constant 0 : index
      %c0_14 = arith.constant 0 : index
      %26 = vector.load %arg6[%c0_13, %c0_14] : memref<1x128xf32, #tpu.memory_space<vmem>>, vector<1x128xf32>
      %cst_15 = arith.constant 9.99999974E-6 : f32
      %27 = vector.broadcast %cst_15 : f32 to vector<1x128xf32>
      %28 = arith.addf %25, %27 : vector<1x128xf32>
      %29 = math.rsqrt %28 : vector<1x128xf32>
      %30 = arith.mulf %26, %29 : vector<1x128xf32>
      %c0_16 = arith.constant 0 : index
      %c0_17 = arith.constant 0 : index
      %31 = vector.load %arg12[%c0_16, %c0_17] : memref<1x128xf32, #tpu.memory_space<vmem>>, vector<1x128xf32>
      tpu.vector_store %arg12[%c0_16, %c0_17], %30 {strides = array<i32>} : memref<1x128xf32, #tpu.memory_space<vmem>>, vector<1x128xf32>,
      %c0_18 = arith.constant 0 : index
      %c0_19 = arith.constant 0 : index
      %32 = vector.load %arg7[%c0_18, %c0_19] : memref<1x128xf32, #tpu.memory_space<vmem>>, vector<1x128xf32>
      %33 = arith.mulf %18, %30 : vector<1x128xf32>
      %34 = arith.subf %32, %33 : vector<1x128xf32>
      %c0_20 = arith.constant 0 : index
      %c0_21 = arith.constant 0 : index
      %35 = vector.load %arg13[%c0_20, %c0_21] : memref<1x128xf32, #tpu.memory_space<vmem>>, vector<1x128xf32>
      tpu.vector_store %arg13[%c0_20, %c0_21], %34 {strides = array<i32>} : memref<1x128xf32, #tpu.memory_space<vmem>>, vector<1x128xf32>,
    } else {
    }
    %c1_i32_6 = arith.constant 1 : i32
    %13 = arith.cmpi eq, %arg0, %c1_i32_6 : i32
    %14 = arith.extui %13 : i1 to i32
    %c0_i32_7 = arith.constant 0 : i32
    %15 = arith.cmpi ne, %14, %c0_i32_7 : i32
    scf.if %15 {
      %16 = arith.index_cast %arg1 : i32 to index
      %c0 = arith.constant 0 : index
      %c0_8 = arith.constant 0 : index
      %17 = vector.load %arg9[%16, %c0, %c0_8] : memref<1x8x128xf32, #tpu.memory_space<vmem>>, vector<1x8x128xf32>
      %18 = vector.shape_cast %17 : vector<1x8x128xf32> to vector<8x128xf32>
      %c0_9 = arith.constant 0 : index
      %c0_10 = arith.constant 0 : index
      %19 = vector.load %arg12[%c0_9, %c0_10] : memref<1x128xf32, #tpu.memory_space<vmem>>, vector<1x128xf32>
      %20 = vector.broadcast %19 : vector<1x128xf32> to vector<8x128xf32>
      %21 = arith.mulf %18, %20 : vector<8x128xf32>
      %c0_11 = arith.constant 0 : index
      %c0_12 = arith.constant 0 : index
      %22 = vector.load %arg13[%c0_11, %c0_12] : memref<1x128xf32, #tpu.memory_space<vmem>>, vector<1x128xf32>
      %23 = vector.broadcast %22 : vector<1x128xf32> to vector<8x128xf32>
      %24 = arith.addf %21, %23 : vector<8x128xf32>
      %25 = vector.extract_strided_slice %24 {offsets = [0, 0], sizes = [8, 10], strides = [1, 1]} : vector<8x128xf32> to vector<8x10xf32>
      %c0_13 = arith.constant 0 : index
      %c0_14 = arith.constant 0 : index
      %26 = vector.load %arg8[%c0_13, %c0_14] : memref<8x10xf32, #tpu.memory_space<vmem>>, vector<8x10xf32>
      tpu.vector_store %arg8[%c0_13, %c0_14], %25 {strides = array<i32>} : memref<8x10xf32, #tpu.memory_space<vmem>>, vector<8x10xf32>,
    } else {
    }
    return
  }
  func.func @transform_0(%arg0: i32, %arg1: i32) -> (i32, i32) {
    %c1_i32 = arith.constant 1 : i32
    %0 = arith.subi %c1_i32, %arg0 : i32
    %1 = arith.muli %0, %arg1 : i32
    %c0_i32 = arith.constant 0 : i32
    %2 = arith.muli %arg0, %c0_i32 : i32
    %3 = arith.addi %1, %2 : i32
    %c0_i32_0 = arith.constant 0 : i32
    %c0_i32_1 = arith.constant 0 : i32
    return %3, %c0_i32_0 : i32, i32
  }
  func.func @transform_1(%arg0: i32, %arg1: i32) -> (i32, i32) {
    %c0_i32 = arith.constant 0 : i32
    %c0_i32_0 = arith.constant 0 : i32
    %c0_i32_1 = arith.constant 0 : i32
    return %c0_i32, %c0_i32_0 : i32, i32
  }
  func.func @transform_2(%arg0: i32, %arg1: i32) -> (i32, i32) {
    %c0_i32 = arith.constant 0 : i32
    %c0_i32_0 = arith.constant 0 : i32
    %c0_i32_1 = arith.constant 0 : i32
    return %c0_i32, %c0_i32_0 : i32, i32
  }
  func.func @transform_3(%arg0: i32, %arg1: i32) -> (i32, i32) {
    %c0_i32 = arith.constant 0 : i32
    %c0_i32_0 = arith.constant 0 : i32
    %c0_i32_1 = arith.constant 0 : i32
    return %c0_i32, %c0_i32_0 : i32, i32
  }
  func.func @transform_4(%arg0: i32, %arg1: i32) -> (i32, i32) {
    %c0_i32 = arith.constant 0 : i32
    %c0_i32_0 = arith.constant 0 : i32
    %c0_i32_1 = arith.constant 0 : i32
    return %c0_i32, %c0_i32_0 : i32, i32
  }
  func.func @transform_5(%arg0: i32, %arg1: i32) -> (i32, i32) {
    %c0_i32 = arith.constant 0 : i32
    %c0_i32_0 = arith.constant 0 : i32
    %c0_i32_1 = arith.constant 0 : i32
    return %c0_i32, %c0_i32_0 : i32, i32
  }
  func.func @transform_6(%arg0: i32, %arg1: i32) -> (i32, i32) {
    %0 = arith.muli %arg0, %arg1 : i32
    %c0_i32 = arith.constant 0 : i32
    %c0_i32_0 = arith.constant 0 : i32
    return %0, %c0_i32 : i32, i32
  }
}

</mosaic_0001>

<bundles_post_ra>
// kernel: mlp_forward.1
= control target key start
LH: loop header
LB: loop body
LE: loop exit
PB: predicated region body
PF: predicated region fallthrough
CT: control target
= control target key end

     0   :  { %11 = vsyncpa [#allocation8], 0  ;;  %s1290_s0 = inlined_call_operand.hbm [shape: f32[8,320], index: 0, kind: input, shape index: {}]   ;;  %s1291_s1 = inlined_call_operand.hbm [shape: f32[320,256], index: 1, kind: input, shape index: {}]   ;;  %s1292_s2 = inlined_call_operand.hbm [shape: f32[1,256], index: 2, kind: input, shape index: {}]   ;;  %s1293_s3 = inlined_call_operand.hbm [shape: f32[256,128], index: 3, kind: input, shape index: {}]   ;;  %s1294_s4 = inlined_call_operand.vmem [shape: f32[1,128], index: 4, kind: input, shape index: {}]   ;;  %s1295_s5 = inlined_call_operand.vmem [shape: f32[1,128], index: 5, kind: input, shape index: {}]   ;;  %s1296_s6 = inlined_call_operand.hbm [shape: f32[8,10], index: 6, kind: output, shape index: {}]  }
   0x1   :  { %13 = vsyncpa [#allocation8 + $0x1], 0 }
   0x2   :  { %14 = vsyncpa [#allocation11], 0 }
   0x3   :  { %15 = vsyncpa [#allocation14], 0 }
   0x4   :  { %16 = vsyncpa [#allocation9], 0 }
   0x5   :  { %18 = vsyncpa [#allocation9 + $0x1], 0  ;;  %s1181_s21 = smov 0   ;;  %s1183_s22 = smov 0  }
   0x6   :  { %s1185_s23 = smov 0  }
   0x7 LB: > { %s835_s24 = sadd.s32 4294967295, %s1134_s23   ;;  %s836_s25 = sadd.s32 4294967294, %s1134_s23   ;;  %s1134_s23 = sphi %s1185_s23, %s24_s23   ;;  %s1130_s22 = sphi %s1183_s22, %s1301_s22   ;;  %s1126_s21 = sphi %s1181_s21, %s1300_s21  }
   0x8   : > { %s36_s26 = sadd.s32 1, %s1130_s22  ;;  %p837_p0 = scmp.ge.s32.totalorder %s1134_s23, 1 }
   0x9   : > { %p38_p1 = scmp.ge.s32.totalorder %s36_s26, 2  ;;  %p204_p2 = scmp.lt.s32.totalorder %s1134_s23, 3 }
   0xa   : > { %p1203_p3 = scmp.eq.s32.totalorder %s835_s24, 0  ;;  %s215_s7 = sshll.u32 %s1291_s1, 4  ;;  %s216_s7 = int_to_ptr.hbm [resolvable:$true] %s215_s7 }
   0xb   : > { %s1303_s26 = smov (%p38_p1, %s36_s26), 0  ;;  %p1209_p4 = pnand %p837_p0, %p204_p2 }
   0xc   : > { %s1136_s8 = smov [#allocation10]   ;;  %p841_p7 = scmp.ge.s32.totalorder %s1134_s23, 2 }
   0xd   : > { %p880_p5 = pneg %p1209_p4  ;;  %s217_s9 = sshll.u32 %s1136_s8, 4  ;;  %s218_s9 = int_to_ptr.vmem [resolvable:$true] %s217_s9 }
   0xe   : > { %s230_s13 = sshll.u32 %s1292_s2, 4  ;;  %s1137_s14 = smov 256   ;;  %s231_s13 = int_to_ptr.hbm [resolvable:$true] %s230_s13 }
   0xf   : > { %p1220_p6 = pnand %p1203_p3, %p880_p5  ;;  %s1138_s15 = smov 16  }
  0x10   : > { %s1139_s16 = smov [#allocation12]   ;;  %s241_s20 = sshll.u32 %s1293_s3, 4  ;;  %s242_s20 = int_to_ptr.hbm [resolvable:$true] %s241_s20 }
  0x11   : > { %883 = dma.hbm_to_vmem [thread:$0]  (!%p1220_p6), %s216_s7, 10240, %s218_s9, [#allocation11], %s1137_s14, %s1137_s14, %s1138_s15  }
  0x12   : > { %s232_s17 = sshll.u32 %s1139_s16, 4  ;;  %s1140_s29 = smov [#allocation13]   ;;  %s233_s17 = int_to_ptr.vmem [resolvable:$true] %s232_s17 }
  0x13   : > { %886 = dma.hbm_to_vmem [thread:$0]  (!%p1220_p6), %s231_s13, 32, %s233_s17, [#allocation11]  }
  0x14   : > { %s243_s30 = sshll.u32 %s1140_s29, 4  ;;  %p901_p8 = scmp.lt.s32.totalorder %s1134_s23, 2  ;;  %s244_s30 = int_to_ptr.vmem [resolvable:$true] %s243_s30 }
  0x15   : > { %s1141_s8 = smov 128   ;;  %s1142_s11 = smov 8  }
  0x16   : > { %889 = dma.hbm_to_vmem [thread:$0]  (!%p1220_p6), %s242_s20, 4096, %s244_s30, [#allocation14], %s1141_s8, %s1141_s8, %s1142_s11  }
  0x17   : > { %p902_p9 = scmp.eq.s32.totalorder %s1134_s23, 0  ;;  %s276_s12 = sshll.u32 %s1290_s0, 4  ;;  %s277_s12 = int_to_ptr.hbm [resolvable:$true] %s276_s12 }
  0x18   : > { %s1143_s14 = smov [#allocation7]   ;;  %287 = sbr.rel (%p1209_p4) target bundleno = 440 (0x1b8), region = 44 }
  0x19   : > { %s278_s15 = sshll.u32 %s1143_s14, 4  ;;  %p891_p10 = pnand %p902_p9, %p901_p8  ;;  %s279_s15 = int_to_ptr.vmem [resolvable:$true] %s278_s15 }
  0x1b   : > { %893 = dma.hbm_to_vmem [thread:$0]  (!%p891_p10), %s277_s12, 384, %s279_s15, [#allocation8]  }
  0x1d   : > { %1109 = dma.done.wait (%p1203_p3), [#allocation8], 384  }
  0x1e   : > { %1111 = vsyncadd (%p1203_p3), [#allocation8], 4294966912 }
  0x1f   : > { %1113 = dma.done.wait (%p1203_p3), [#allocation11], 10272  }
  0x20   : > { %1115 = vsyncadd (%p1203_p3), [#allocation11], 4294957024 }
  0x21   : > { %1117 = dma.done.wait (%p1203_p3), [#allocation14], 4096  }
  0x22   : > { %1119 = vsyncadd (%p1203_p3), [#allocation14], 4294963200  ;;  %p341_p11 = scmp.eq.s32.totalorder %s1126_s21, 0 }
  0x23   : > { %v1144_v0 = vmov (%p341_p11), 0.0  }
  0x24   : > { %346 = sbr.rel (!%p341_p11) target bundleno = 41 (0x29), region = 64  ;;  %347 = vst [vmem:[#allocation3] sm:$0x1] (%p341_p11), %v1144_v0 }
  0x25   : > { %348 = vst [vmem:[#allocation4] sm:$0x1] (%p341_p11), %v1144_v0 }
  0x29 PF: > { %p849_p12 = scmp.ne.s32.totalorder %s1126_s21, 0 }
  0x2b   : > { %351 = sbr.rel (%p849_p12) target bundleno = 383 (0x17f), region = 68 }
  0x30   : > { %v433_v1 = vld [vmem:[#allocation10 + $0x270] sm:$0xff]  ;;  %v431_v2 = vld [vmem:[#allocation10 + $0x260] sm:$0xff]  ;;  %v386_v10 = vld [vmem:[#allocation10 + $0xf8] sm:$0xff]  ;;  %vm441_vm0 = vcmask 523264  }
  0x31   : > { %493 = vmatpush.msra.mxu2 %v433_v1  ;;  %v385_v3 = vld [vmem:[#allocation10 + $0xf0] sm:$0xff]  ;;  %v383_v5 = vld [vmem:[#allocation10 + $0xe0] sm:$0xff]  ;;  %v384_v13 = vld [vmem:[#allocation10 + $0xe8] sm:$0xff]  ;;  %505 = vmatpush.msra.mxu3 %v386_v10 }
  0x32   : > { %v429_v4 = vld [vmem:[#allocation10 + $0x250] sm:$0xff]  ;;  %445 = vmatpush.msra.mxu0 %v385_v3  ;;  %v415_v8 = vld [vmem:[#allocation10 + $0x1e0] sm:$0xff]  ;;  %v382_v17 = vld [vmem:[#allocation10 + $0xd8] sm:$0xff] }
  0x33   : > { %v417_v6 = vld [vmem:[#allocation10 + $0x1f0] sm:$0xff]  ;;  %494 = vmatpush.msra.mxu2 %v431_v2  ;;  %v427_v9 = vld [vmem:[#allocation10 + $0x240] sm:$0xff]  ;;  %506 = vmatpush.msra.mxu3 %v384_v13  ;;  %v380_v21 = vld [vmem:[#allocation10 + $0xc8] sm:$0xff] }
  0x34   : > { %465 = vmatpush.msra.mxu1 %v417_v6  ;;  %v381_v7 = vld [vmem:[#allocation10 + $0xd0] sm:$0xff]  ;;  %446 = vmatpush.msra.mxu0 %v383_v5  ;;  %v379_v11 = vld [vmem:[#allocation10 + $0xc0] sm:$0xff]  ;;  %v378_v25 = vld [vmem:[#allocation10 + $0xb8] sm:$0xff] }
  0x35   : > { %495 = vmatpush.msra.mxu2 %v429_v4  ;;  %v413_v12 = vld [vmem:[#allocation10 + $0x1d0] sm:$0xff]  ;;  %v411_v15 = vld [vmem:[#allocation10 + $0x1c0] sm:$0xff]  ;;  %507 = vmatpush.msra.mxu3 %v382_v17  ;;  %v418_v28 = vld [vmem:[#allocation10 + $0x1f8] sm:$0xff] }
  0x36   : > { %466 = vmatpush.msra.mxu1 %v415_v8  ;;  %v425_v14 = vld [vmem:[#allocation10 + $0x230] sm:$0xff]  ;;  %447 = vmatpush.msra.mxu0 %v381_v7  ;;  %v423_v18 = vld [vmem:[#allocation10 + $0x220] sm:$0xff]  ;;  %v376_v30 = vld [vmem:[#allocation10 + $0xa8] sm:$0xff] }
  0x37   : > { %496 = vmatpush.msra.mxu2 %v427_v9  ;;  %v377_v16 = vld [vmem:[#allocation10 + $0xb0] sm:$0xff]  ;;  %v375_v20 = vld [vmem:[#allocation10 + $0xa0] sm:$0xff]  ;;  %508 = vmatpush.msra.mxu3 %v380_v21  ;;  %v416_v32 = vld [vmem:[#allocation10 + $0x1e8] sm:$0xff] }
  0x38   : > { %467 = vmatpush.msra.mxu1 %v413_v12  ;;  %448 = vmatpush.msra.mxu0 %v379_v11  ;;  %v409_v19 = vld [vmem:[#allocation10 + $0x1b0] sm:$0xff]  ;;  %v407_v23 = vld [vmem:[#allocation10 + $0x1a0] sm:$0xff]  ;;  %v374_v34 = vld [vmem:[#allocation10 + $0x98] sm:$0xff] }
  0x39   : > { %497 = vmatpush.msra.mxu2 %v425_v14  ;;  %v421_v22 = vld [vmem:[#allocation10 + $0x210] sm:$0xff]  ;;  %v419_v26 = vld [vmem:[#allocation10 + $0x200] sm:$0xff]  ;;  %509 = vmatpush.msra.mxu3 %v378_v25  ;;  %v414_v36 = vld [vmem:[#allocation10 + $0x1d8] sm:$0xff] }
  0x3a   : > { %468 = vmatpush.msra.mxu1 %v411_v15  ;;  %449 = vmatpush.msra.mxu0 %v377_v16  ;;  %v373_v24 = vld [vmem:[#allocation10 + $0x90] sm:$0xff]  ;;  %v371_v29 = vld [vmem:[#allocation10 + $0x80] sm:$0xff]  ;;  %v372_v38 = vld [vmem:[#allocation10 + $0x88] sm:$0xff] }
  0x3b   : > { %498 = vmatpush.msra.mxu2 %v423_v18  ;;  %v405_v27 = vld [vmem:[#allocation10 + $0x190] sm:$0xff]  ;;  %v403_v31 = vld [vmem:[#allocation10 + $0x180] sm:$0xff]  ;;  %510 = vmatpush.msra.mxu3 %v376_v30  ;;  %v412_v40 = vld [vmem:[#allocation10 + $0x1c8] sm:$0xff] }
  0x3c   : > { %469 = vmatpush.msra.mxu1 %v409_v19  ;;  %450 = vmatpush.msra.mxu0 %v375_v20  ;;  %v369_v33 = vld [vmem:[#allocation10 + $0x70] sm:$0xff]  ;;  %v367_v37 = vld [vmem:[#allocation10 + $0x60] sm:$0xff]  ;;  %v370_v42 = vld [vmem:[#allocation10 + $0x78] sm:$0xff] }
  0x3d   : > { %499 = vmatpush.msra.mxu2 %v421_v22  ;;  %v401_v35 = vld [vmem:[#allocation10 + $0x170] sm:$0xff]  ;;  %v399_v39 = vld [vmem:[#allocation10 + $0x160] sm:$0xff]  ;;  %511 = vmatpush.msra.mxu3 %v374_v34  ;;  %v410_v44 = vld [vmem:[#allocation10 + $0x1b8] sm:$0xff] }
  0x3e   : > { %470 = vmatpush.msra.mxu1 %v407_v23  ;;  %451 = vmatpush.msra.mxu0 %v373_v24  ;;  %v365_v41 = vld [vmem:[#allocation10 + $0x50] sm:$0xff]  ;;  %v363_v45 = vld [vmem:[#allocation10 + $0x40] sm:$0xff]  ;;  %v368_v46 = vld [vmem:[#allocation10 + $0x68] sm:$0xff] }
  0x3f   : > { %500 = vmatpush.msra.mxu2 %v419_v26  ;;  %v397_v43 = vld [vmem:[#allocation10 + $0x150] sm:$0xff]  ;;  %512 = vmatpush.msra.mxu3 %v372_v38  ;;  %v395_v47 = vld [vmem:[#allocation10 + $0x140] sm:$0xff]  ;;  %v408_v48 = vld [vmem:[#allocation10 + $0x1a8] sm:$0xff] }
  0x40   : > { %471 = vmatpush.msra.mxu1 %v405_v27  ;;  %452 = vmatpush.msra.mxu0 %v371_v29  ;;  %v361_v49 = vld [vmem:[#allocation10 + $0x30] sm:$0xff]  ;;  %v366_v50 = vld [vmem:[#allocation10 + $0x58] sm:$0xff]  ;;  %v359_v53 = vld [vmem:[#allocation10 + $0x20] sm:$0xff] }
  0x41   : > { %525 = vmatpush.msrb.mxu2 %v418_v28  ;;  %513 = vmatpush.msra.mxu3 %v370_v42  ;;  %v393_v51 = vld [vmem:[#allocation10 + $0x130] sm:$0xff]  ;;  %v406_v52 = vld [vmem:[#allocation10 + $0x198] sm:$0xff]  ;;  %v364_v54 = vld [vmem:[#allocation10 + $0x48] sm:$0xff] }
  0x42   : > { %472 = vmatpush.msra.mxu1 %v403_v31  ;;  %453 = vmatpush.msra.mxu0 %v369_v33  ;;  %v391_v55 = vld [vmem:[#allocation10 + $0x120] sm:$0xff]  ;;  %v404_v56 = vld [vmem:[#allocation10 + $0x188] sm:$0xff]  ;;  %v357_v57 = vld [vmem:[#allocation10 + $0x10] sm:$0xff] }
  0x43   : > { %526 = vmatpush.msrb.mxu2 %v416_v32  ;;  %514 = vmatpush.msra.mxu3 %v368_v46  ;;  %v362_v58 = vld [vmem:[#allocation10 + $0x38] sm:$0xff]  ;;  %v1258_v59 = vld [vmem:[#allocation7 + $0x10] sm:$0xff]  ;;  %v389_v62 = vld [vmem:[#allocation10 + $0x110] sm:$0xff] }
  0x44   : > { %473 = vmatpush.msra.mxu1 %v401_v35  ;;  %454 = vmatpush.msra.mxu0 %v367_v37  ;;  %v402_v60 = vld [vmem:[#allocation10 + $0x178] sm:$0xff]  ;;  %v355_v61 = vld [vmem:[#allocation10] sm:$0xff]  ;;  %v360_v63 = vld [vmem:[#allocation10 + $0x28] sm:$0xff] }
  0x45   : > { %527 = vmatpush.msrb.mxu2 %v414_v36  ;;  %515 = vmatpush.msra.mxu3 %v366_v50  ;;  %v400_v0 = vld [vmem:[#allocation10 + $0x168] sm:$0xff]  ;;  %v434_v1 = vld [vmem:[#allocation10 + $0x278] sm:$0xff]  ;;  %v352_v2 = vld [vmem:[#allocation7] sm:$0xff] }
  0x46   : > { %474 = vmatpush.msra.mxu1 %v399_v39  ;;  %455 = vmatpush.msra.mxu0 %v365_v41  ;;  %v387_v3 = vld [vmem:[#allocation10 + $0x100] sm:$0xff]  ;;  %v398_v4 = vld [vmem:[#allocation10 + $0x158] sm:$0xff]  ;;  %v432_v6 = vld [vmem:[#allocation10 + $0x268] sm:$0xff] }
  0x47   : > { %528 = vmatpush.msrb.mxu2 %v412_v40  ;;  %516 = vmatpush.msra.mxu3 %v364_v54  ;;  %v358_v5 = vld [vmem:[#allocation10 + $0x18] sm:$0xff]  ;;  %v396_v8 = vld [vmem:[#allocation10 + $0x148] sm:$0xff] }
  0x48   : > { %475 = vmatpush.msra.mxu1 %v397_v43  ;;  %456 = vmatpush.msra.mxu0 %v363_v45  ;;  %v353_v7 = vld [vmem:[#allocation7 + $0x8] sm:$0xff]  ;;  %v356_v9 = vld [vmem:[#allocation10 + $0x8] sm:$0xff] }
  0x49   : > { %529 = vmatpush.msrb.mxu2 %v410_v44  ;;  %517 = vmatpush.msra.mxu3 %v362_v58  ;;  %v430_v10 = vld [vmem:[#allocation10 + $0x258] sm:$0xff]  ;;  %v428_v13 = vld [vmem:[#allocation10 + $0x248] sm:$0xff] }
  0x4a   : > { %476 = vmatpush.msra.mxu1 %v395_v47  ;;  %457 = vmatpush.msra.mxu0 %v361_v49  ;;  %v394_v11 = vld [vmem:[#allocation10 + $0x138] sm:$0xff]  ;;  %v392_v15 = vld [vmem:[#allocation10 + $0x128] sm:$0xff] }
  0x4b   : > { %530 = vmatpush.msrb.mxu2 %v408_v48  ;;  %518 = vmatpush.msra.mxu3 %v360_v63  ;;  %v580_v12 = vld [vmem:[#allocation13 + $0x78] sm:$0xff]  ;;  %v579_v16 = vld [vmem:[#allocation13 + $0x70] sm:$0xff]  ;;  %v578_v20 = vld [vmem:[#allocation13 + $0x68] sm:$0xff] }
  0x4c   : > { %477 = vmatpush.msra.mxu1 %v393_v51  ;;  %458 = vmatpush.msra.mxu0 %v359_v53  ;;  %v596_v14 = vld [vmem:[#allocation13 + $0xf8] sm:$0xff]  ;;  %v595_v18 = vld [vmem:[#allocation13 + $0xf0] sm:$0xff]  ;;  %v424_v21 = vld [vmem:[#allocation10 + $0x228] sm:$0xff] }
  0x4d   : > { %531 = vmatpush.msrb.mxu2 %v406_v52  ;;  %519 = vmatpush.msra.mxu3 %v358_v5  ;;  %v426_v17 = vld [vmem:[#allocation10 + $0x238] sm:$0xff]  ;;  %v594_v22 = vld [vmem:[#allocation13 + $0xe8] sm:$0xff]  ;;  %v577_v24 = vld [vmem:[#allocation13 + $0x60] sm:$0xff] }
  0x4e   : > { %478 = vmatpush.msra.mxu1 %v391_v55  ;;  %459 = vmatpush.msra.mxu0 %v357_v57  ;;  %v390_v19 = vld [vmem:[#allocation10 + $0x118] sm:$0xff]  ;;  %v388_v23 = vld [vmem:[#allocation10 + $0x108] sm:$0xff]  ;;  %v435_v52 = vld [vmem:[#allocation12] sm:$0x3] }
  0x4f   : > { %532 = vmatpush.msrb.mxu2 %v404_v56  ;;  %520 = vmatpush.msra.mxu3 %v356_v9  ;;  %v422_v25 = vld [vmem:[#allocation10 + $0x218] sm:$0xff]  ;;  %v593_v27 = vld [vmem:[#allocation13 + $0xe0] sm:$0xff]  ;;  %v574_v31 = vld [vmem:[#allocation13 + $0x48] sm:$0xff]  ;;  %v437_v53 = vperm.slane %v435_v52, 0 }
  0x50   : > { %850 = vmatmul.msk.f32.vlgmr.msra.gmra.mxu2 %vm441_vm0, %v1258_v59  ;;  %460 = vmatpush.msra.mxu0 %v355_v61  ;;  %v576_v26 = vld [vmem:[#allocation13 + $0x58] sm:$0xff]  ;;  %v420_v28 = vld [vmem:[#allocation10 + $0x208] sm:$0xff]  ;;  %v575_v29 = vld [vmem:[#allocation13 + $0x50] sm:$0xff] }
  0x51   : > { %533 = vmatpush.msrb.mxu2 %v402_v60  ;;  %479 = vmatpush.msra.mxu1 %v389_v62  ;;  %v592_v30 = vld [vmem:[#allocation13 + $0xd8] sm:$0xff]  ;;  %v591_v32 = vld [vmem:[#allocation13 + $0xd0] sm:$0xff]  ;;  %v573_v33 = vld [vmem:[#allocation13 + $0x40] sm:$0xff]  ;;  %v438_v60 = vperm.slane %v435_v52, 1 }
  0x52   : > { %553 = vmatpush.msrb.mxu0 %v434_v1  ;;  %521 = vmatmul.f32.vlgmr.msra.gmra.mxu3 %v352_v2  ;;  %v590_v34 = vld [vmem:[#allocation13 + $0xc8] sm:$0xff]  ;;  %v572_v35 = vld [vmem:[#allocation13 + $0x38] sm:$0xff]  ;;  %v571_v36 = vld [vmem:[#allocation13 + $0x30] sm:$0xff] }
  0x53   : > { %534 = vmatpush.msrb.mxu2 %v400_v0  ;;  %461 = vmatmul.f32.vlgmr.msra.gmra.mxu0 %v352_v2  ;;  %v570_v37 = vld [vmem:[#allocation13 + $0x28] sm:$0xff]  ;;  %v569_v38 = vld [vmem:[#allocation13 + $0x20] sm:$0xff]  ;;  %v568_v39 = vld [vmem:[#allocation13 + $0x18] sm:$0xff] }
  0x54   : > { %480 = vmatpush.msra.mxu1 %v387_v3  ;;  %554 = vmatpush.msrb.mxu0 %v432_v6  ;;  %v589_v40 = vld [vmem:[#allocation13 + $0xc0] sm:$0xff]  ;;  %v567_v41 = vld [vmem:[#allocation13 + $0x10] sm:$0xff]  ;;  %v588_v42 = vld [vmem:[#allocation13 + $0xb8] sm:$0xff] }
  0x55   : > { %535 = vmatpush.msrb.mxu2 %v398_v4  ;;  %481 = vmatmul.f32.vlgmr.msra.gmra.mxu1 %v353_v7  ;;  %v566_v43 = vld [vmem:[#allocation13 + $0x8] sm:$0xff]  ;;  %v587_v44 = vld [vmem:[#allocation13 + $0xb0] sm:$0xff]  ;;  %v565_v45 = vld [vmem:[#allocation13] sm:$0xff] }
  0x56   : > { %555 = vmatpush.msrb.mxu0 %v430_v10  ;;  %597 = vmatpush.msrb.mxu1 %v580_v12  ;;  %v586_v46 = vld [vmem:[#allocation13 + $0xa8] sm:$0xff]  ;;  %v585_v47 = vld [vmem:[#allocation13 + $0xa0] sm:$0xff]  ;;  %v584_v48 = vld [vmem:[#allocation13 + $0x98] sm:$0xff] }
  0x57   : > { %536 = vmatpush.msrb.mxu2 %v396_v8  ;;  %617 = vmatpush.msrb.mxu3 %v596_v14  ;;  %v583_v49 = vld [vmem:[#allocation13 + $0x90] sm:$0xff]  ;;  %v582_v50 = vld [vmem:[#allocation13 + $0x88] sm:$0xff]  ;;  %v581_v51 = vld [vmem:[#allocation13 + $0x80] sm:$0xff] }
  0x58   : > { %556 = vmatpush.msrb.mxu0 %v428_v13  ;;  %598 = vmatpush.msrb.mxu1 %v579_v16  ;;  %v640_v16 = vld [vmem:[#allocation3] sm:$0x1] }
  0x59   : > { %537 = vmatpush.msrb.mxu2 %v394_v11  ;;  %618 = vmatpush.msrb.mxu3 %v595_v18 }
  0x5a   : > { %557 = vmatpush.msrb.mxu0 %v426_v17  ;;  %599 = vmatpush.msrb.mxu1 %v578_v20 }
  0x5b   : > { %538 = vmatpush.msrb.mxu2 %v392_v15  ;;  %619 = vmatpush.msrb.mxu3 %v594_v22 }
  0x5c   : > { %558 = vmatpush.msrb.mxu0 %v424_v21  ;;  %600 = vmatpush.msrb.mxu1 %v577_v24 }
  0x5d   : > { %539 = vmatpush.msrb.mxu2 %v390_v19  ;;  %620 = vmatpush.msrb.mxu3 %v593_v27  ;;  %v649_v19 = vld [vmem:[#allocation4] sm:$0x1] }
  0x5e   : > { %559 = vmatpush.msrb.mxu0 %v422_v25  ;;  %601 = vmatpush.msrb.mxu1 %v576_v26 }
  0x5f   : > { %540 = vmatpush.msrb.mxu2 %v388_v23  ;;  %621 = vmatpush.msrb.mxu3 %v592_v30 }
  0x60   : > { %541 = vmatmul.f32.vlgmr.msrb.gmra.mxu2 %v353_v7  ;;  %560 = vmatpush.msrb.mxu0 %v420_v28 }
  0x61   : > { %851 = vmatmul.msk.f32.vlgmr.msrb.gmra.mxu0 %vm441_vm0, %v1258_v59  ;;  %602 = vmatpush.msrb.mxu1 %v575_v29 }
  0x62   : > { %622 = vmatpush.msrb.mxu3 %v591_v32 }
  0x63   : > { %603 = vmatpush.msrb.mxu1 %v574_v31 }
  0x64   : > { %623 = vmatpush.msrb.mxu3 %v590_v34 }
  0x65   : > { %604 = vmatpush.msrb.mxu1 %v573_v33 }
  0x66   : > { %624 = vmatpush.msrb.mxu3 %v589_v40 }
  0x67   : > { %605 = vmatpush.msrb.mxu1 %v572_v35 }
  0x68   : > { %625 = vmatpush.msrb.mxu3 %v588_v42 }
  0x69   : > { %606 = vmatpush.msrb.mxu1 %v571_v36 }
  0x6a   : > { %626 = vmatpush.msrb.mxu3 %v587_v44 }
  0x6b   : > { %607 = vmatpush.msrb.mxu1 %v570_v37 }
  0x6c   : > { %627 = vmatpush.msrb.mxu3 %v586_v46 }
  0x6d   : > { %608 = vmatpush.msrb.mxu1 %v569_v38 }
  0x6e   : > { %628 = vmatpush.msrb.mxu3 %v585_v47 }
  0x6f   : > { %609 = vmatpush.msrb.mxu1 %v568_v39 }
  0x70   : > { %629 = vmatpush.msrb.mxu3 %v584_v48 }
  0x71   : > { %610 = vmatpush.msrb.mxu1 %v567_v41 }
  0x72   : > { %630 = vmatpush.msrb.mxu3 %v583_v49 }
  0x73   : > { %611 = vmatpush.msrb.mxu1 %v566_v43 }
  0x74   : > { %631 = vmatpush.msrb.mxu3 %v582_v50 }
  0x75   : > { %612 = vmatpush.msrb.mxu1 %v565_v45 }
  0x76   : > { %632 = vmatpush.msrb.mxu3 %v581_v51 }
  0xd0   : > { %v462_v54 = vpop.f32.mrf.mxu0 }
  0xd1   : > { %v463_v55 = vadd.f32 %v462_v54, %v437_v53 }
  0xd2   : > { %v482_v56 = vpop.f32.mrf.mxu1 }
  0xd3   : > { %v502_v57 = vpop.f32.mrf.mxu2  ;;  %v483_v58 = vadd.f32 %v482_v56, %v463_v55 }
  0xd5   : > { %v503_v59 = vadd.f32 %v502_v57, %v483_v58  ;;  %v522_v61 = vpop.f32.mrf.mxu3 }
  0xd6   : > { %v523_v62 = vadd.f32 %v522_v61, %v438_v60 }
  0xd7   : > { %613 = vmatmul.f32.vlgmr.msrb.gmra.mxu1 %v503_v59 }
  0xde   : > { %v562_v0 = vpop.f32.mrf.mxu0 }
  0xe3   : > { %v542_v63 = vpop.f32.mrf.mxu2 }
  0xe4   : > { %v543_v1 = vadd.f32 %v542_v63, %v523_v62 }
  0xe6   : > { %v563_v2 = vadd.f32 %v562_v0, %v543_v1 }
  0xe8   : > { %633 = vmatmul.f32.vlgmr.msrb.gmra.mxu3 %v563_v2 }
 0x154   : > { %v614_v3 = vpop.f32.mrf.mxu1 }
 0x16b   : > { %v634_v4 = vpop.f32.mrf.mxu3 }
 0x16c   : > { %v635_v5 = vadd.f32 %v634_v4, %v614_v3 }
 0x16e   : > { %639 = vst [vmem:[#allocation2] sm:$0xff] %v635_v5  ;;  %v641_v6 = vrot.slane %v635_v5, 4  ;;  %v650_v7 = vmul.f32 %v635_v5, %v635_v5 }
 0x170   : > { %v642_v8 = vadd.f32 %v641_v6, %v635_v5  ;;  %v651_v9 = vrot.slane %v650_v7, 4 }
 0x172   : > { %v643_v10 = vrot.slane %v642_v8, 2  ;;  %v652_v11 = vadd.f32 %v651_v9, %v650_v7 }
 0x174   : > { %v644_v12 = vadd.f32 %v643_v10, %v642_v8  ;;  %v653_v13 = vrot.slane %v652_v11, 2 }
 0x176   : > { %v645_v14 = vrot.slane %v644_v12, 1  ;;  %v654_v15 = vadd.f32 %v653_v13, %v652_v11 }
 0x178   : > { %v646_v17 = vadd.f32 %v645_v14, %v644_v12  ;;  %v655_v18 = vrot.slane %v654_v15, 1 }
 0x17a   : > { %v647_v20 = vadd.f32 %v646_v17, %v640_v16  ;;  %v656_v21 = vadd.f32 %v655_v18, %v654_v15 }
 0x17c   : > { %648 = vst [vmem:[#allocation3] sm:$0x1] %v647_v20  ;;  %v657_v22 = vadd.f32 %v656_v21, %v649_v19 }
 0x17e   : > { %658 = vst [vmem:[#allocation4] sm:$0x1] %v657_v22 }
 0x17f PF: > { %p659_p13 = scmp.eq.s32.totalorder %s1126_s21, 1 }
 0x180   : > { %v671_v36 = vld [vmem:[%s1294_s4] sm:$0x1] (%p659_p13) }
 0x181   : > { %663 = sbr.rel (!%p659_p13) target bundleno = 423 (0x1a7), region = 72  ;;  %v685_v40 = vld [vmem:[%s1295_s5] sm:$0x1] (%p659_p13) }
 0x183   : > { %v664_v23 = vld [vmem:[#allocation3] sm:$0x1] (%p659_p13) }
 0x184   : > { %v665_v25 = vmul.f32 (%p659_p13), 0.125, %v664_v23 }
 0x185   : > { %v666_v24 = vld [vmem:[#allocation4] sm:$0x1] (%p659_p13) }
 0x186   : > { %v667_v26 = vmul.f32 0.125, %v666_v24  ;;  %v668_v27 = vmul.f32 %v665_v25, %v665_v25 }
 0x188   : > { %v669_v28 = vsub.f32 %v667_v26, %v668_v27 }
 0x18a   : > { %v670_v29 = vmax.f32 %v669_v28, 0.0 }
 0x18c   : > { %v672_v30 = vadd.f32 1e-05, %v670_v29 }
 0x18e   : > { %944 = vrsqrt.f32 %v672_v30  ;;  %vm679_vm1 = vweird.f32 %v672_v30 }
 0x194   : > { %v945_v31 = vpop.eup %944 }
 0x195   : > { %v674_v32 = vmul.f32 %v945_v31, %v672_v30  ;;  %vm680_vm2 = vweird.f32 %v945_v31 }
 0x196   : > { %vm681_vm3 = vmor %vm679_vm1, %vm680_vm2 }
 0x197   : > { %v675_v33 = vmul.f32 %v945_v31, %v674_v32 }
 0x199   : > { %v676_v34 = vmul.f32 0.5, %v675_v33 }
 0x19b   : > { %v677_v35 = vsub.f32 1.5, %v676_v34 }
 0x19d   : > { %v678_v37 = vmul.f32 %v945_v31, %v677_v35 }
 0x19f   : > { %v682_v38 = vsel %vm681_vm3, %v945_v31, %v678_v37 }
 0x1a0   : > { %v683_v39 = vmul.f32 %v682_v38, %v671_v36 }
 0x1a2   : > { %684 = vst [vmem:[#allocation5] sm:$0x1] %v683_v39  ;;  %v686_v41 = vmul.f32 %v683_v39, %v665_v25 }
 0x1a4   : > { %v687_v42 = vsub.f32 %v685_v40, %v686_v41 }
 0x1a6   : > { %688 = vst [vmem:[#allocation6] sm:$0x1] %v687_v42 }
 0x1a7 PF: > { %p853_p0 = scmp.ne.s32.totalorder %s1126_s21, 1 }
 0x1a9   : > { %691 = sbr.rel (%p853_p0) target bundleno = 436 (0x1b4), region = 76 }
 0x1ae   : > { %v694_v43 = vld [vmem:[#allocation2] sm:$0xff]  ;;  %v946_v44 = vld [vmem:[#allocation5] ss:$0 sm:$0xff]  ;;  %v947_v45 = vld [vmem:[#allocation6] ss:$0 sm:$0xff]  ;;  %vm705_vm4 = vcmask 80896  }
 0x1af   : > { %v699_v46 = vmul.f32 %v946_v44, %v694_v43 }
 0x1b1   : > { %v704_v47 = vadd.f32 %v947_v45, %v699_v46 }
 0x1b3   : > { %706 = vst.msk [vmem:[#allocation15] sm:$0xff] %vm705_vm4, %v704_v47 }
 0x1b4 PF: > { %p907_p1 = scmp.eq.s32.totalorder %s835_s24, 1  ;;  %s723_s18 = sshll.u32 %s1296_s6, 4  ;;  %s724_s18 = int_to_ptr.hbm [resolvable:$true] %s723_s18 }
 0x1b5   : > { %s1145_s19 = smov [#allocation15]  }
 0x1b6   : > { %s721_s20 = sshll.u32 %s1145_s19, 4  ;;  %s722_s20 = int_to_ptr.vmem [resolvable:$true] %s721_s20 }
 0x1b7   : > { %877 = dma.vmem_to_hbm [thread:$0]  (%p907_p1), %s722_s20, 128, %s724_s18, [#allocation9]  }
 0x1b8 PF: > { %p909_p2 = scmp.eq.s32.totalorder %s836_s25, 1 }
 0x1ba   : > { %p895_p3 = pnand %p909_p2, %p841_p7 }
 0x1bc   : > { %p896_p4 = pneg %p895_p3 }
 0x1be   : > { %1121 = dma.done.wait (%p896_p4), [#allocation9], 128  }
 0x1bf   : > { %1123 = vsyncadd (%p896_p4), [#allocation9], 4294967168  ;;  %s24_s23 = sadd.s32 1, %s1134_s23   ;;  %s1300_s21 = smov %s1130_s22 }
 0x1c0   : > { %p21_p5 = scmp.ge.s32.totalorder %s24_s23, 4   ;;  %s1301_s22 = smov %s1303_s26 }
 0x1c2   :  { %23 = sbr.rel (!%p21_p5) target bundleno = 7 (0x7), region = 119 }
 0x1c7   :  { %742 = vsyncpa [#allocation8], 1 }
 0x1c8   :  { %744 = vsyncpa [#allocation8 + $0x1], 1 }
 0x1c9   :  { %745 = vsyncpa [#allocation11], 1 }
 0x1ca   :  { %746 = vsyncpa [#allocation14], 1 }
 0x1cb   :  { %747 = vsyncpa [#allocation9], 1 }
 0x1cc   :  { %749 = vsyncpa [#allocation9 + $0x1], 1 }

</bundles_post_ra>
